<compile_context>
chip_gen: v5e
topology: v5e:2x2
jax: 0.10.0
libtpu: 0.0.40
codegen_flags: <defaults>
</compile_context>

<pallas_src>
import functools

import jax
import jax.numpy as jnp
from jax.experimental import pallas as pl
from jax.experimental.pallas import tpu as pltpu


def _round_up(x, m):
    return (x + m - 1) // m * m


# ----------------------------------------------------------------------------
# Fused forward kernel (one grid step = one (batch, HW-tile) block)
# ----------------------------------------------------------------------------

def _fused_vae_kernel(
    x_ref, eps_ref,
    enc_w_ref, enc_b_ref,
    qm_w_ref, qm_b_ref,          # quant_conv rows producing the mean
    qv_w_ref, qv_b_ref,          # quant_conv rows producing the logvar
    post_w_ref, post_b_ref,
    dec_w_ref, dec_b_ref,
    dec_ref, mean_ref, logvar_ref,
    *, sample_posterior: bool,
):
    x = x_ref[0].astype(jnp.float32)                                   # (Cin, T)

    # encoder (modeled as a single 1x1 conv honoring the channel contract)
    # TODO(synk): real encoder/decoder are external ResNet/attention stacks
    # built via instantiate_from_config; only the 1x1-conv contract is kept.
    h = jnp.dot(enc_w_ref[...], x,
                preferred_element_type=jnp.float32) + enc_b_ref[...]   # (2zc, T)

    # quant_conv, split so mean/logvar come out as two lane-dense tensors
    mean = jnp.dot(qm_w_ref[...], h,
                   preferred_element_type=jnp.float32) + qm_b_ref[...]  # (E, T)
    logvar = jnp.dot(qv_w_ref[...], h,
                     preferred_element_type=jnp.float32) + qv_b_ref[...]
    logvar = jnp.clip(logvar, -30.0, 20.0)

    # DiagonalGaussianDistribution.sample() / .mode()
    if sample_posterior:
        z = mean + jnp.exp(0.5 * logvar) * eps_ref[0].astype(jnp.float32)
    else:
        z = mean

    # decode: post_quant_conv then decoder (1x1 convs)
    pq = jnp.dot(post_w_ref[...], z,
                 preferred_element_type=jnp.float32) + post_b_ref[...]  # (zc, T)
    dec = jnp.dot(dec_w_ref[...], pq,
                  preferred_element_type=jnp.float32) + dec_b_ref[...]  # (Co, T)

    dec_ref[0] = dec.astype(dec_ref.dtype)
    mean_ref[0] = mean.astype(mean_ref.dtype)
    logvar_ref[0] = logvar.astype(logvar_ref.dtype)


# ----------------------------------------------------------------------------
# Parameter init (deterministic, synthetic — no checkpoint loading)
# Weights stored as (Cout, Cin) matrices == Conv2d(cin, cout, 1).weight[:, :, 0, 0]
# ----------------------------------------------------------------------------

def _conv1x1_params(key, cin, cout, w_scale=0.2, b_scale=0.02):
    kw, kb = jax.random.split(key)
    w = jax.random.normal(kw, (cout, cin), jnp.float32) * w_scale
    b = jax.random.normal(kb, (cout, 1), jnp.float32) * b_scale
    return w, b


def init_params(key, in_ch, out_ch, z_channels, embed_dim):
    ks = jax.random.split(key, 4)
    return {
        "encoder": _conv1x1_params(ks[0], in_ch, 2 * z_channels),
        "quant_conv": _conv1x1_params(ks[1], 2 * z_channels, 2 * embed_dim),
        "post_quant_conv": _conv1x1_params(ks[2], embed_dim, z_channels),
        "decoder": _conv1x1_params(ks[3], z_channels, out_ch),
    }


# ----------------------------------------------------------------------------
# Forward pass (AutoencoderKLRollOut.forward semantics), single pallas_call
# ----------------------------------------------------------------------------

def forward(params, x, eps, sample_posterior_flag=True, *, thw_cap=2048):
    """x: (N, Cin, H, W), eps: (N, embed_dim, H, W).
    Returns (dec, (posterior_mean, posterior_logvar)) in NCHW."""
    n, cin, hh, ww = x.shape
    hw = hh * ww

    enc_w, enc_b = params["encoder"]
    q_w, q_b = params["quant_conv"]
    pq_w, pq_b = params["post_quant_conv"]
    dec_w, dec_b = params["decoder"]

    embed_dim = pq_w.shape[1]
    out_ch = dec_w.shape[0]

    # Split quant_conv into its mean / logvar halves (tiny constants).
    qm_w, qv_w = q_w[:embed_dim], q_w[embed_dim:]
    qm_b, qv_b = q_b[:embed_dim], q_b[embed_dim:]

    # (N, C, H*W): H*W on the lane axis; no transposes.
    x3 = x.reshape(n, cin, hw)
    eps3 = eps.reshape(n, embed_dim, hw)

    # Lane tile: multiple of 128, as large as sensible; pad HW if needed.
    thw = min(_round_up(hw, 128), thw_cap)
    hwp = _round_up(hw, thw)
    if hwp != hw:
        pad = ((0, 0), (0, 0), (0, hwp - hw))
        x3 = jnp.pad(x3, pad)
        eps3 = jnp.pad(eps3, pad)

    grid = (n, hwp // thw)
    n_steps = grid[0] * grid[1]
    # Only shard across cores when there is enough work to feed them.
    sem = "parallel" if n_steps >= 8 else "arbitrary"

    def tile_spec(c):
        return pl.BlockSpec((1, c, thw), lambda i, j: (i, 0, j))

    def full_spec(a):
        return pl.BlockSpec(a.shape, lambda i, j: (0, 0))

    kernel = functools.partial(
        _fused_vae_kernel, sample_posterior=bool(sample_posterior_flag))

    dec3, mean3, logvar3 = pl.pallas_call(
        kernel,
        out_shape=(
            jax.ShapeDtypeStruct((n, out_ch, hwp), x.dtype),
            jax.ShapeDtypeStruct((n, embed_dim, hwp), x.dtype),
            jax.ShapeDtypeStruct((n, embed_dim, hwp), x.dtype),
        ),
        grid_spec=pl.GridSpec(
            grid=grid,
            in_specs=[
                tile_spec(cin), tile_spec(embed_dim),
                full_spec(enc_w), full_spec(enc_b),
                full_spec(qm_w), full_spec(qm_b),
                full_spec(qv_w), full_spec(qv_b),
                full_spec(pq_w), full_spec(pq_b),
                full_spec(dec_w), full_spec(dec_b),
            ],
            out_specs=(
                tile_spec(out_ch), tile_spec(embed_dim), tile_spec(embed_dim),
            ),
        ),
        compiler_params=pltpu.CompilerParams(
            dimension_semantics=(sem, sem),
            vmem_limit_bytes=32 * 1024 * 1024,
        ),
    )(x3, eps3, enc_w, enc_b, qm_w, qm_b, qv_w, qv_b, pq_w, pq_b, dec_w, dec_b)

    dec = dec3[:, :, :hw].reshape(n, out_ch, hh, ww)
    mean = mean3[:, :, :hw].reshape(n, embed_dim, hh, ww)
    logvar = logvar3[:, :, :hw].reshape(n, embed_dim, hh, ww)
    return dec, (mean, logvar)


# ----------------------------------------------------------------------------
# Pure-JAX reference (for correctness check)
# ----------------------------------------------------------------------------

def forward_reference(params, x, eps, sample_posterior_flag=True):
    enc_w, enc_b = params["encoder"]
    q_w, q_b = params["quant_conv"]
    pq_w, pq_b = params["post_quant_conv"]
    dec_w, dec_b = params["decoder"]
    embed_dim = pq_w.shape[1]

    def conv1x1(t, w, b):
        return jnp.einsum("oc,nchw->nohw", w, t) + b.reshape(1, -1, 1, 1)

    h = conv1x1(x, enc_w, enc_b)
    moments = conv1x1(h, q_w, q_b)
    mean = moments[:, :embed_dim]
    logvar = jnp.clip(moments[:, embed_dim:], -30.0, 20.0)
    z = mean + jnp.exp(0.5 * logvar) * eps if sample_posterior_flag else mean
    dec = conv1x1(conv1x1(z, pq_w, pq_b), dec_w, dec_b)
    return dec, (mean, logvar)


# ----------------------------------------------------------------------------
# Driver
# ----------------------------------------------------------------------------

if __name__ == "__main__":
    key = jax.random.PRNGKey(0)
    k_param, k_x, k_eps = jax.random.split(key, 3)

    B, C_in, H, W = 2, 4, 16, 16      # NCHW input, as in the PyTorch module
    z_channels, embed_dim = 4, 4

    params = init_params(k_param, C_in, C_in, z_channels, embed_dim)
    x = jax.random.normal(k_x, (B, C_in, H, W), jnp.float32)
    eps = jax.random.normal(k_eps, (B, embed_dim, H, W), jnp.float32)

    fwd = jax.jit(functools.partial(forward, sample_posterior_flag=True))
    dec, (mean, logvar) = fwd(params, x, eps)
    jax.block_until_ready(dec)

    assert dec.shape == (B, C_in, H, W), dec.shape
    assert mean.shape == (B, embed_dim, H, W), mean.shape
    assert logvar.shape == (B, embed_dim, H, W), logvar.shape
    assert jnp.all(jnp.isfinite(dec)) and jnp.all(jnp.isfinite(mean))
    assert jnp.all(jnp.isfinite(logvar))

    # Compare against a pure-JAX reference (loose tolerance: MXU f32 matmul
    # precision differs from XLA einsum default).
    dec_r, (mean_r, logvar_r) = forward_reference(params, x, eps, True)
    assert float(jnp.max(jnp.abs(dec - dec_r))) < 1e-1
    assert float(jnp.max(jnp.abs(mean - mean_r))) < 1e-1
    assert float(jnp.max(jnp.abs(logvar - logvar_r))) < 1e-1

    print("KERNEL_OK")
</pallas_src>

<mosaic_0001>
module attributes {stable_mosaic.version = 11 : i64} {
  func.func @_fused_vae_kernel(%arg0: i32, %arg1: i32, %arg2: memref<1x4x256xf32, #tpu.memory_space<vmem>>, %arg3: memref<1x4x256xf32, #tpu.memory_space<vmem>>, %arg4: memref<8x4xf32, #tpu.memory_space<vmem>>, %arg5: memref<8x1xf32, #tpu.memory_space<vmem>>, %arg6: memref<4x8xf32, #tpu.memory_space<vmem>>, %arg7: memref<4x1xf32, #tpu.memory_space<vmem>>, %arg8: memref<4x8xf32, #tpu.memory_space<vmem>>, %arg9: memref<4x1xf32, #tpu.memory_space<vmem>>, %arg10: memref<4x4xf32, #tpu.memory_space<vmem>>, %arg11: memref<4x1xf32, #tpu.memory_space<vmem>>, %arg12: memref<4x4xf32, #tpu.memory_space<vmem>>, %arg13: memref<4x1xf32, #tpu.memory_space<vmem>>, %arg14: memref<1x4x256xf32, #tpu.memory_space<vmem>>, %arg15: memref<1x4x256xf32, #tpu.memory_space<vmem>>, %arg16: memref<1x4x256xf32, #tpu.memory_space<vmem>>) attributes {dimension_semantics = [#tpu.dimension_semantics<arbitrary>, #tpu.dimension_semantics<arbitrary>], iteration_bounds = array<i64: 2, 1>, scalar_prefetch = 0 : i64, scratch_operands = 0 : i64, tpu.core_type = #tpu.core_type<tc>, window_params = [{transform_indices = @transform_0, window_bounds = array<i64: 1, 4, 256>}, {transform_indices = @transform_1, window_bounds = array<i64: 1, 4, 256>}, {pipeline_mode = #tpu.pipeline_mode<synchronous>, transform_indices = @transform_2, window_bounds = array<i64: 8, 4>}, {pipeline_mode = #tpu.pipeline_mode<synchronous>, transform_indices = @transform_3, window_bounds = array<i64: 8, 1>}, {pipeline_mode = #tpu.pipeline_mode<synchronous>, transform_indices = @transform_4, window_bounds = array<i64: 4, 8>}, {pipeline_mode = #tpu.pipeline_mode<synchronous>, transform_indices = @transform_5, window_bounds = array<i64: 4, 1>}, {pipeline_mode = #tpu.pipeline_mode<synchronous>, transform_indices = @transform_6, window_bounds = array<i64: 4, 8>}, {pipeline_mode = #tpu.pipeline_mode<synchronous>, transform_indices = @transform_7, window_bounds = array<i64: 4, 1>}, {pipeline_mode = #tpu.pipeline_mode<synchronous>, transform_indices = @transform_8, window_bounds = array<i64: 4, 4>}, {pipeline_mode = #tpu.pipeline_mode<synchronous>, transform_indices = @transform_9, window_bounds = array<i64: 4, 1>}, {pipeline_mode = #tpu.pipeline_mode<synchronous>, transform_indices = @transform_10, window_bounds = array<i64: 4, 4>}, {pipeline_mode = #tpu.pipeline_mode<synchronous>, transform_indices = @transform_11, window_bounds = array<i64: 4, 1>}, {transform_indices = @transform_12, window_bounds = array<i64: 1, 4, 256>}, {transform_indices = @transform_13, window_bounds = array<i64: 1, 4, 256>}, {transform_indices = @transform_14, window_bounds = array<i64: 1, 4, 256>}]} {
    %c0 = arith.constant 0 : index
    %c0_0 = arith.constant 0 : index
    %c0_1 = arith.constant 0 : index
    %0 = vector.load %arg2[%c0, %c0_0, %c0_1] : memref<1x4x256xf32, #tpu.memory_space<vmem>>, vector<1x4x256xf32>
    %1 = vector.shape_cast %0 : vector<1x4x256xf32> to vector<4x256xf32>
    %c0_2 = arith.constant 0 : index
    %c0_3 = arith.constant 0 : index
    %2 = vector.load %arg4[%c0_2, %c0_3] : memref<8x4xf32, #tpu.memory_space<vmem>>, vector<8x4xf32>
    %cst = arith.constant dense<0.000000e+00> : vector<8x256xf32>
    %3 = tpu.matmul %2, %1, %cst {dimension_numbers = #tpu.dot_dimension_numbers<[1], [0], [0], [1], [0, 0, 1, 1], [], []>} : vector<8x4xf32>, vector<4x256xf32>, vector<8x256xf32> -> vector<8x256xf32>
    %c0_4 = arith.constant 0 : index
    %c0_5 = arith.constant 0 : index
    %4 = vector.load %arg5[%c0_4, %c0_5] : memref<8x1xf32, #tpu.memory_space<vmem>>, vector<8x1xf32>
    %5 = vector.broadcast %4 : vector<8x1xf32> to vector<8x256xf32>
    %6 = arith.addf %3, %5 : vector<8x256xf32>
    %c0_6 = arith.constant 0 : index
    %c0_7 = arith.constant 0 : index
    %7 = vector.load %arg6[%c0_6, %c0_7] : memref<4x8xf32, #tpu.memory_space<vmem>>, vector<4x8xf32>
    %cst_8 = arith.constant dense<0.000000e+00> : vector<4x256xf32>
    %8 = tpu.matmul %7, %6, %cst_8 {dimension_numbers = #tpu.dot_dimension_numbers<[1], [0], [0], [1], [0, 0, 1, 1], [], []>} : vector<4x8xf32>, vector<8x256xf32>, vector<4x256xf32> -> vector<4x256xf32>
    %c0_9 = arith.constant 0 : index
    %c0_10 = arith.constant 0 : index
    %9 = vector.load %arg7[%c0_9, %c0_10] : memref<4x1xf32, #tpu.memory_space<vmem>>, vector<4x1xf32>
    %10 = vector.broadcast %9 : vector<4x1xf32> to vector<4x256xf32>
    %11 = arith.addf %8, %10 : vector<4x256xf32>
    %c0_11 = arith.constant 0 : index
    %c0_12 = arith.constant 0 : index
    %12 = vector.load %arg8[%c0_11, %c0_12] : memref<4x8xf32, #tpu.memory_space<vmem>>, vector<4x8xf32>
    %cst_13 = arith.constant dense<0.000000e+00> : vector<4x256xf32>
    %13 = tpu.matmul %12, %6, %cst_13 {dimension_numbers = #tpu.dot_dimension_numbers<[1], [0], [0], [1], [0, 0, 1, 1], [], []>} : vector<4x8xf32>, vector<8x256xf32>, vector<4x256xf32> -> vector<4x256xf32>
    %c0_14 = arith.constant 0 : index
    %c0_15 = arith.constant 0 : index
    %14 = vector.load %arg9[%c0_14, %c0_15] : memref<4x1xf32, #tpu.memory_space<vmem>>, vector<4x1xf32>
    %15 = vector.broadcast %14 : vector<4x1xf32> to vector<4x256xf32>
    %16 = arith.addf %13, %15 : vector<4x256xf32>
    %cst_16 = arith.constant -3.000000e+01 : f32
    %cst_17 = arith.constant 2.000000e+01 : f32
    %17 = vector.broadcast %cst_16 : f32 to vector<4x256xf32>
    %18 = arith.maximumf %17, %16 : vector<4x256xf32>
    %19 = vector.broadcast %cst_17 : f32 to vector<4x256xf32>
    %20 = arith.minimumf %19, %18 : vector<4x256xf32>
    %cst_18 = arith.constant 5.000000e-01 : f32
    %21 = vector.broadcast %cst_18 : f32 to vector<4x256xf32>
    %22 = arith.mulf %21, %20 : vector<4x256xf32>
    %23 = math.exp %22 : vector<4x256xf32>
    %c0_19 = arith.constant 0 : index
    %c0_20 = arith.constant 0 : index
    %c0_21 = arith.constant 0 : index
    %24 = vector.load %arg3[%c0_19, %c0_20, %c0_21] : memref<1x4x256xf32, #tpu.memory_space<vmem>>, vector<1x4x256xf32>
    %25 = vector.shape_cast %24 : vector<1x4x256xf32> to vector<4x256xf32>
    %26 = arith.mulf %23, %25 : vector<4x256xf32>
    %27 = arith.addf %11, %26 : vector<4x256xf32>
    %c0_22 = arith.constant 0 : index
    %c0_23 = arith.constant 0 : index
    %28 = vector.load %arg10[%c0_22, %c0_23] : memref<4x4xf32, #tpu.memory_space<vmem>>, vector<4x4xf32>
    %cst_24 = arith.constant dense<0.000000e+00> : vector<4x256xf32>
    %29 = tpu.matmul %28, %27, %cst_24 {dimension_numbers = #tpu.dot_dimension_numbers<[1], [0], [0], [1], [0, 0, 1, 1], [], []>} : vector<4x4xf32>, vector<4x256xf32>, vector<4x256xf32> -> vector<4x256xf32>
    %c0_25 = arith.constant 0 : index
    %c0_26 = arith.constant 0 : index
    %30 = vector.load %arg11[%c0_25, %c0_26] : memref<4x1xf32, #tpu.memory_space<vmem>>, vector<4x1xf32>
    %31 = vector.broadcast %30 : vector<4x1xf32> to vector<4x256xf32>
    %32 = arith.addf %29, %31 : vector<4x256xf32>
    %c0_27 = arith.constant 0 : index
    %c0_28 = arith.constant 0 : index
    %33 = vector.load %arg12[%c0_27, %c0_28] : memref<4x4xf32, #tpu.memory_space<vmem>>, vector<4x4xf32>
    %cst_29 = arith.constant dense<0.000000e+00> : vector<4x256xf32>
    %34 = tpu.matmul %33, %32, %cst_29 {dimension_numbers = #tpu.dot_dimension_numbers<[1], [0], [0], [1], [0, 0, 1, 1], [], []>} : vector<4x4xf32>, vector<4x256xf32>, vector<4x256xf32> -> vector<4x256xf32>
    %c0_30 = arith.constant 0 : index
    %c0_31 = arith.constant 0 : index
    %35 = vector.load %arg13[%c0_30, %c0_31] : memref<4x1xf32, #tpu.memory_space<vmem>>, vector<4x1xf32>
    %36 = vector.broadcast %35 : vector<4x1xf32> to vector<4x256xf32>
    %37 = arith.addf %34, %36 : vector<4x256xf32>
    %c0_32 = arith.constant 0 : index
    %c0_33 = arith.constant 0 : index
    %c0_34 = arith.constant 0 : index
    %38 = vector.load %arg14[%c0_32, %c0_33, %c0_34] : memref<1x4x256xf32, #tpu.memory_space<vmem>>, vector<1x4x256xf32>
    %39 = vector.shape_cast %38 : vector<1x4x256xf32> to vector<4x256xf32>
    %40 = vector.shape_cast %37 : vector<4x256xf32> to vector<1x4x256xf32>
    tpu.vector_store %arg14[%c0_32, %c0_33, %c0_34], %40 {strides = array<i32>} : memref<1x4x256xf32, #tpu.memory_space<vmem>>, vector<1x4x256xf32>,
    %c0_35 = arith.constant 0 : index
    %c0_36 = arith.constant 0 : index
    %c0_37 = arith.constant 0 : index
    %41 = vector.load %arg15[%c0_35, %c0_36, %c0_37] : memref<1x4x256xf32, #tpu.memory_space<vmem>>, vector<1x4x256xf32>
    %42 = vector.shape_cast %41 : vector<1x4x256xf32> to vector<4x256xf32>
    %43 = vector.shape_cast %11 : vector<4x256xf32> to vector<1x4x256xf32>
    tpu.vector_store %arg15[%c0_35, %c0_36, %c0_37], %43 {strides = array<i32>} : memref<1x4x256xf32, #tpu.memory_space<vmem>>, vector<1x4x256xf32>,
    %c0_38 = arith.constant 0 : index
    %c0_39 = arith.constant 0 : index
    %c0_40 = arith.constant 0 : index
    %44 = vector.load %arg16[%c0_38, %c0_39, %c0_40] : memref<1x4x256xf32, #tpu.memory_space<vmem>>, vector<1x4x256xf32>
    %45 = vector.shape_cast %44 : vector<1x4x256xf32> to vector<4x256xf32>
    %46 = vector.shape_cast %20 : vector<4x256xf32> to vector<1x4x256xf32>
    tpu.vector_store %arg16[%c0_38, %c0_39, %c0_40], %46 {strides = array<i32>} : memref<1x4x256xf32, #tpu.memory_space<vmem>>, vector<1x4x256xf32>,
    return
  }
  func.func @transform_0(%arg0: i32, %arg1: i32) -> (i32, i32, i32) {
    %c0_i32 = arith.constant 0 : i32
    %c0_i32_0 = arith.constant 0 : i32
    return %arg0, %c0_i32, %arg1 : i32, i32, i32
  }
  func.func @transform_1(%arg0: i32, %arg1: i32) -> (i32, i32, i32) {
    %c0_i32 = arith.constant 0 : i32
    %c0_i32_0 = arith.constant 0 : i32
    return %arg0, %c0_i32, %arg1 : i32, i32, i32
  }
  func.func @transform_2(%arg0: i32, %arg1: i32) -> (i32, i32) {
    %c0_i32 = arith.constant 0 : i32
    %c0_i32_0 = arith.constant 0 : i32
    %c0_i32_1 = arith.constant 0 : i32
    return %c0_i32, %c0_i32_0 : i32, i32
  }
  func.func @transform_3(%arg0: i32, %arg1: i32) -> (i32, i32) {
    %c0_i32 = arith.constant 0 : i32
    %c0_i32_0 = arith.constant 0 : i32
    %c0_i32_1 = arith.constant 0 : i32
    return %c0_i32, %c0_i32_0 : i32, i32
  }
  func.func @transform_4(%arg0: i32, %arg1: i32) -> (i32, i32) {
    %c0_i32 = arith.constant 0 : i32
    %c0_i32_0 = arith.constant 0 : i32
    %c0_i32_1 = arith.constant 0 : i32
    return %c0_i32, %c0_i32_0 : i32, i32
  }
  func.func @transform_5(%arg0: i32, %arg1: i32) -> (i32, i32) {
    %c0_i32 = arith.constant 0 : i32
    %c0_i32_0 = arith.constant 0 : i32
    %c0_i32_1 = arith.constant 0 : i32
    return %c0_i32, %c0_i32_0 : i32, i32
  }
  func.func @transform_6(%arg0: i32, %arg1: i32) -> (i32, i32) {
    %c0_i32 = arith.constant 0 : i32
    %c0_i32_0 = arith.constant 0 : i32
    %c0_i32_1 = arith.constant 0 : i32
    return %c0_i32, %c0_i32_0 : i32, i32
  }
  func.func @transform_7(%arg0: i32, %arg1: i32) -> (i32, i32) {
    %c0_i32 = arith.constant 0 : i32
    %c0_i32_0 = arith.constant 0 : i32
    %c0_i32_1 = arith.constant 0 : i32
    return %c0_i32, %c0_i32_0 : i32, i32
  }
  func.func @transform_8(%arg0: i32, %arg1: i32) -> (i32, i32) {
    %c0_i32 = arith.constant 0 : i32
    %c0_i32_0 = arith.constant 0 : i32
    %c0_i32_1 = arith.constant 0 : i32
    return %c0_i32, %c0_i32_0 : i32, i32
  }
  func.func @transform_9(%arg0: i32, %arg1: i32) -> (i32, i32) {
    %c0_i32 = arith.constant 0 : i32
    %c0_i32_0 = arith.constant 0 : i32
    %c0_i32_1 = arith.constant 0 : i32
    return %c0_i32, %c0_i32_0 : i32, i32
  }
  func.func @transform_10(%arg0: i32, %arg1: i32) -> (i32, i32) {
    %c0_i32 = arith.constant 0 : i32
    %c0_i32_0 = arith.constant 0 : i32
    %c0_i32_1 = arith.constant 0 : i32
    return %c0_i32, %c0_i32_0 : i32, i32
  }
  func.func @transform_11(%arg0: i32, %arg1: i32) -> (i32, i32) {
    %c0_i32 = arith.constant 0 : i32
    %c0_i32_0 = arith.constant 0 : i32
    %c0_i32_1 = arith.constant 0 : i32
    return %c0_i32, %c0_i32_0 : i32, i32
  }
  func.func @transform_12(%arg0: i32, %arg1: i32) -> (i32, i32, i32) {
    %c0_i32 = arith.constant 0 : i32
    %c0_i32_0 = arith.constant 0 : i32
    return %arg0, %c0_i32, %arg1 : i32, i32, i32
  }
  func.func @transform_13(%arg0: i32, %arg1: i32) -> (i32, i32, i32) {
    %c0_i32 = arith.constant 0 : i32
    %c0_i32_0 = arith.constant 0 : i32
    return %arg0, %c0_i32, %arg1 : i32, i32, i32
  }
  func.func @transform_14(%arg0: i32, %arg1: i32) -> (i32, i32, i32) {
    %c0_i32 = arith.constant 0 : i32
    %c0_i32_0 = arith.constant 0 : i32
    return %arg0, %c0_i32, %arg1 : i32, i32, i32
  }
}

</mosaic_0001>

<bundles_post_ra>
// kernel: forward.1
= control target key start
LH: loop header
LB: loop body
LE: loop exit
PB: predicated region body
PF: predicated region fallthrough
CT: control target
= control target key end

     0   :  { %s1278_s29 = smov 0   ;;  %s1280_s30 = smov 0   ;;  %s1372_s0 = inlined_call_operand.vmem [shape: f32[2,4,256], index: 0, kind: input, shape index: {}]   ;;  %s1373_s1 = inlined_call_operand.vmem [shape: f32[2,4,256], index: 1, kind: input, shape index: {}]   ;;  %s1374_s2 = inlined_call_operand.vmem [shape: f32[8,4], index: 2, kind: input, shape index: {}]   ;;  %s1375_s3 = inlined_call_operand.vmem [shape: f32[8,1], index: 3, kind: input, shape index: {}]   ;;  %s1376_s4 = inlined_call_operand.vmem [shape: f32[4,8], index: 4, kind: input, shape index: {}]   ;;  %s1377_s5 = inlined_call_operand.vmem [shape: f32[4,1], index: 5, kind: input, shape index: {}]   ;;  %s1378_s6 = inlined_call_operand.vmem [shape: f32[4,8], index: 6, kind: input, shape index: {}]   ;;  %s1379_s7 = inlined_call_operand.vmem [shape: f32[4,1], index: 7, kind: input, shape index: {}]   ;;  %s1380_s8 = inlined_call_operand.vmem [shape: f32[4,4], index: 8, kind: input, shape index: {}]   ;;  %s1381_s9 = inlined_call_operand.vmem [shape: f32[4,1], index: 9, kind: input, shape index: {}]   ;;  %s1382_s10 = inlined_call_operand.vmem [shape: f32[4,4], index: 10, kind: input, shape index: {}]   ;;  %s1383_s11 = inlined_call_operand.vmem [shape: f32[4,1], index: 11, kind: input, shape index: {}]   ;;  %s1384_s12 = inlined_call_operand.vmem [shape: f32[2,4,256], index: 12, kind: output, shape index: {0}]   ;;  %s1385_s13 = inlined_call_operand.vmem [shape: f32[2,4,256], index: 13, kind: output, shape index: {1}]   ;;  %s1386_s14 = inlined_call_operand.vmem [shape: f32[2,4,256], index: 14, kind: output, shape index: {2}]  }
   0x1   :  { %s1282_s15 = smov 0  }
   0x2 LB: > { %s37_s16 = sadd.s32 1, %s1196_s30  ;;  %p1112_p0 = scmp.ge.s32.totalorder %s1200_s15, 1  ;;  %s1200_s15 = sphi %s1282_s15, %s25_s15   ;;  %s1196_s30 = sphi %s1280_s30, %s1388_s30   ;;  %s1192_s29 = sphi %s1278_s29, %s1387_s29  }
   0x3   : > { %p39_p1 = scmp.ge.s32.totalorder %s37_s16, 2  ;;  %p459_p2 = scmp.lt.s32.totalorder %s1200_s15, 3 }
   0x5   : > { %s1390_s16 = smov (%p39_p1, %s37_s16), 0  ;;  %p460_p3 = pnand %p1112_p0, %p459_p2 }
   0x6   : > { %p541_p4 = scmp.lt.s32.totalorder (!%p460_p3), %s1192_s29, 1 }
   0x7   : > { %463 = sbr.rel (%p460_p3) target bundleno = 571 (0x23b), region = 68 }
   0xc   : > { %v592_v0 = vld [vmem:[%s1375_s3] sm:$0xff]  ;;  %v1202_v1 = vmov 0   ;;  %s1392_s29 = smov (!%p541_p4, %s1192_s29), 1  ;;  %vm606_vm0 = vcmask 1043456   ;;  %vm602_vm1 = vcmask 31744   ;;  %vm658_vm2 = vcmask 64512  }
   0xd   : > { %1171 = vset.pattern.permute.xlu0 %v1202_v1  ;;  %1172 = vset.pattern.permute.xlu1 %v1202_v1  ;;  %s1299_s19 = sshll.u32 %s1392_s29, 3  ;;  %v703_v3 = vld [vmem:[%s1379_s7] sm:$0xf] }
   0xe   : > { %595 = vperm.xlu0 %1171, %v592_v0   ;;  %1173 = vset.pattern.permute.xlu2 %v1202_v1  ;;  %s548_s22 = scalar_lea.vmem %s1372_s0, %s1299_s19  ;;  %s558_s27 = scalar_lea.vmem %s1373_s1, %s1299_s19  ;;  %v591_v5 = vld [vmem:[%s1374_s2] sm:$0xff] }
   0xf   : > { %v590_v2 = vld [vmem:[%s548_s22] sm:$0xff]  ;;  %s588_s28 = scalar_lea.vmem %s1386_s14, %s1299_s19  ;;  %s578_s18 = scalar_lea.vmem %s1385_s13, %s1299_s19 }
  0x10   : > { %599 = vst [vmem:[#allocation1] ss:$2 sm:$0xff] %v590_v2  ;;  %v762_v4 = vld [vmem:[%s558_s27] sm:$0xff] }
  0x11   : > { %v652_v8 = vld [vmem:[%s1377_s5] sm:$0xf] }
  0x12   : > { %655 = vperm.xlu1 %1172, %v652_v8   ;;  %v774_v9 = vld [vmem:[%s1381_s9] sm:$0xf] }
  0x13   : > { %v702_v15 = vld [vmem:[%s1378_s6] sm:$0xf] }
  0x14   : > { %v651_v16 = vld [vmem:[%s1376_s4] sm:$0xf] }
  0x15   : > { %v773_v46 = vld [vmem:[%s1380_s8] sm:$0xf] }
  0x16   : > { %706 = vperm.xlu0 %1171, %v703_v3   ;;  %v830_v48 = vld [vmem:[%s1383_s11] sm:$0xf] }
  0x17   : > { %v600_v6 = vld.sshfl [vmem:[#allocation1] sm:$0xff pattern:$0x75316420]  ;;  %v601_v7 = vld.sshfl [vmem:[#allocation1 + $0x8] sm:$0xff pattern:$0x75316420]  ;;  %833 = vperm.xlu2 %1173, %v830_v48  }
  0x18   : > { %1123 = vmatpush.msk.msra.mxu0 %vm606_vm0, %v600_v6  ;;  %1125 = vmatpush.msk.msra.mxu1 %vm606_vm0, %v601_v7  ;;  %764 = vst [vmem:[#allocation1] ss:$2 sm:$0xff] %v762_v4  ;;  %v829_v53 = vld [vmem:[%s1382_s10] sm:$0xf] }
  0x19   : > { %1124 = vmatmul.msk.f32.vlgmr.msra.gmra.mxu0 %vm602_vm1, %v591_v5  ;;  %1126 = vmatmul.msk.f32.vlgmr.msra.gmra.mxu1 %vm602_vm1, %v591_v5 }
  0x1a   : > { %777 = vperm.xlu1 %1172, %v774_v9  }
  0x1f   : > { %v765_v39 = vld.sshfl [vmem:[#allocation1] sm:$0xff pattern:$0x75316420]  ;;  %v766_v40 = vld.sshfl [vmem:[#allocation1 + $0x8] sm:$0xff pattern:$0x75316420] }
  0x71   : > { %v834_v55 = vpop.permute.xlu2 %833 }
  0x80   : > { %v596_v10 = vpop.permute.xlu0 %595 }
  0x84   : > { %v656_v26 = vpop.permute.xlu1 %655 }
  0x88   : > { %v707_v17 = vpop.permute.xlu0 %706 }
  0x8c   : > { %v778_v49 = vpop.permute.xlu1 %777 }
  0x96   : > { %v628_v11 = vpop.f32.mrf.mxu0  ;;  %v648_v12 = vpop.f32.mrf.mxu1 }
  0x97   : > { %v629_v13 = vadd.f32 %v628_v11, %v596_v10  ;;  %v649_v14 = vadd.f32 %v648_v12, %v596_v10 }
  0x99   : > { %677 = vmatpush.msra.mxu2 %v629_v13  ;;  %697 = vmatpush.msra.mxu3 %v649_v14 }
  0x9a   : > { %727 = vmatpush.msrb.mxu0 %v629_v13  ;;  %747 = vmatpush.msrb.mxu1 %v649_v14 }
  0x9b   : > { %1129 = vmatmul.msk.f32.vlgmr.msrb.gmra.mxu0 %vm658_vm2, %v702_v15  ;;  %1130 = vmatmul.msk.f32.vlgmr.msrb.gmra.mxu1 %vm658_vm2, %v702_v15 }
  0x9c   : > { %1128 = vmatmul.msk.f32.vlgmr.msra.gmra.mxu3 %vm658_vm2, %v651_v16  ;;  %1127 = vmatmul.msk.f32.vlgmr.msra.gmra.mxu2 %vm658_vm2, %v651_v16 }
 0x118   : > { %v729_v18 = vpop.f32.mrf.mxu0  ;;  %v749_v19 = vpop.f32.mrf.mxu1 }
 0x119   : > { %v730_v20 = vadd.f32 %v729_v18, %v707_v17  ;;  %v750_v21 = vadd.f32 %v749_v19, %v707_v17 }
 0x11b   : > { %v752_v22 = vmax.f32 %v730_v20, -30.0  ;;  %v753_v23 = vmax.f32 %v750_v21, -30.0 }
 0x11d   : > { %v754_v24 = vmin.f32 %v752_v22, 20.0  ;;  %v755_v25 = vmin.f32 %v753_v23, 20.0 }
 0x11f   : > { %v756_v27 = vmul.f32 0.5, %v754_v24  ;;  %v757_v28 = vmul.f32 0.5, %v755_v25  ;;  %v899_v29 = vrot.slane %v755_v25, 4  ;;  %v699_v30 = vpop.f32.mrf.mxu3  ;;  %v679_v31 = vpop.f32.mrf.mxu2 }
 0x120   : > { %v700_v32 = vadd.f32 %v699_v30, %v656_v26  ;;  %v680_v33 = vadd.f32 %v679_v31, %v656_v26 }
 0x121   : > { %v758_v34 = vmul.f32 1.442695, %v756_v27  ;;  %v760_v35 = vmul.f32 1.442695, %v757_v28  ;;  %v900_v36 = vsel %vm606_vm0, %v754_v24, %v899_v29 }
 0x122   : > { %902 = vst [vmem:[%s588_s28] sm:$0xff] %v900_v36  ;;  %v893_v37 = vrot.slane %v700_v32, 4  ;;  %s568_s28 = scalar_lea.vmem %s1384_s12, %s1299_s19 }
 0x123   : > { %1174 = vpow2.f32 %v758_v34 }
 0x124   : > { %1176 = vpow2.f32 %v760_v35  ;;  %v894_v38 = vsel %vm606_vm0, %v680_v33, %v893_v37 }
 0x125   : > { %896 = vst [vmem:[%s578_s18] sm:$0xff] %v894_v38 }
 0x129   : > { %v1175_v41 = vpop.eup %1174 }
 0x12a   : > { %v1177_v42 = vpop.eup %1176  ;;  %v769_v43 = vmul.f32 %v1175_v41, %v765_v39 }
 0x12b   : > { %v770_v44 = vmul.f32 %v1177_v42, %v766_v40 }
 0x12c   : > { %v771_v45 = vadd.f32 %v769_v43, %v680_v33 }
 0x12d   : > { %v772_v47 = vadd.f32 %v770_v44, %v700_v32 }
 0x12e   : > { %1131 = vmatpush.msk.msrb.mxu2 %vm606_vm0, %v771_v45 }
 0x12f   : > { %1133 = vmatpush.msk.msrb.mxu3 %vm606_vm0, %v772_v47  ;;  %1132 = vmatmul.msk.f32.vlgmr.msrb.gmra.mxu2 %vm602_vm1, %v773_v46 }
 0x130   : > { %1134 = vmatmul.msk.f32.vlgmr.msrb.gmra.mxu3 %vm602_vm1, %v773_v46 }
 0x1b2   : > { %v806_v50 = vpop.f32.mrf.mxu2 }
 0x1b3   : > { %v807_v51 = vadd.f32 %v806_v50, %v778_v49  ;;  %v826_v52 = vpop.f32.mrf.mxu3 }
 0x1b4   : > { %v827_v54 = vadd.f32 %v826_v52, %v778_v49 }
 0x1b5   : > { %1135 = vmatpush.msk.msra.mxu0 %vm606_vm0, %v807_v51 }
 0x1b6   : > { %1137 = vmatpush.msk.msra.mxu1 %vm606_vm0, %v827_v54  ;;  %1136 = vmatmul.msk.f32.vlgmr.msra.gmra.mxu0 %vm602_vm1, %v829_v53 }
 0x1b7   : > { %1138 = vmatmul.msk.f32.vlgmr.msra.gmra.mxu1 %vm602_vm1, %v829_v53 }
 0x233   : > { %v862_v57 = vpop.f32.mrf.mxu0 }
 0x234   : > { %v882_v56 = vpop.f32.mrf.mxu1  ;;  %v863_v60 = vadd.f32 %v862_v57, %v834_v55 }
 0x235   : > { %v883_v58 = vadd.f32 %v882_v56, %v834_v55 }
 0x237   : > { %v887_v59 = vrot.slane %v883_v58, 4 }
 0x239   : > { %v888_v61 = vsel %vm606_vm0, %v863_v60, %v887_v59 }
 0x23a   : > { %890 = vst [vmem:[%s568_s28] sm:$0xff] %v888_v61 }
 0x23b PF: > { %s25_s15 = sadd.s32 1, %s1200_s15   ;;  %s1387_s29 = smov %s1196_s30 }
 0x23c   : > { %p22_p5 = scmp.ge.s32.totalorder %s25_s15, 4   ;;  %s1388_s30 = smov %s1390_s16 }
 0x23e   :  { %24 = sbr.rel (!%p22_p5) target bundleno = 2 (0x2), region = 125 }

</bundles_post_ra>
